<compile_context>
chip_gen: v5e
topology: v5e:2x2
jax: 0.10.0
libtpu: 0.0.40
codegen_flags: <defaults>
</compile_context>

<pallas_src>
import functools

import jax
import jax.numpy as jnp
from jax.experimental import pallas as pl
from jax.experimental.pallas import tpu as pltpu


def _round_up(n, m):
    return ((n + m - 1) // m) * m


def _silu(v):
    # SiLU / swish: v * sigmoid(v).  exp -> EUP, divide/mul -> VPU.
    return v * (1.0 / (1.0 + jnp.exp(-v)))


def _head_kernel(matmul_dtype,
                 x_ref, w1_ref, b1_ref, w2_ref, b2_ref, w3_ref, b3_ref,
                 logits_ref):
    """One row tile per grid step: fused FFN + residual + out_fc."""
    x = x_ref[...]                                        # (rt, H) f32

    def mm(a, w):
        # MXU matmul with f32 accumulation; bf16 operands on v6e/v7x double
        # the MXU rate (elementwise math stays f32, esp. for v5e).
        return jnp.dot(a.astype(matmul_dtype), w.astype(matmul_dtype),
                       preferred_element_type=jnp.float32)

    # nn.Sequential(Linear(H, 4H), SiLU, Dropout(0.1), Linear(4H, H), SiLU)
    # TODO(synk): nn.Dropout(0.1) is identity in eval mode; training-mode
    # stochastic masking is not implemented here.
    h1 = _silu(mm(x, w1_ref[...]) + b1_ref[...])          # (rt, 4H)
    h2 = _silu(mm(h1, w2_ref[...]) + b2_ref[...])         # (rt, H)
    h = x + h2                                            # residual add

    # out_fc (H -> 1): contract the feature dim of both operands so the result
    # is a lane-dense (1, rt) row (no kh.T-style transpose, no masked stores).
    lg = jax.lax.dot_general(w3_ref[...], h, (((1,), (1,)), ((), ())),
                             preferred_element_type=jnp.float32)  # (1, rt)
    logits_ref[0] = lg + b3_ref[0]


def bernoulli_prediction_head(decoder_feats, params, *,
                              matmul_dtype=jnp.float32, row_tile=512):
    """decoder_feats: (..., H) -> logits: (...) (last dim squeezed)."""
    H = decoder_feats.shape[-1]
    lead = decoder_feats.shape[:-1]
    x2 = decoder_feats.reshape(-1, H).astype(jnp.float32)  # flatten batch*seq rows
    n = x2.shape[0]

    rt = min(row_tile, _round_up(n, 8))                    # sublane-aligned row tile
    n_pad = _round_up(n, rt)
    if n_pad != n:
        x2 = jnp.pad(x2, ((0, n_pad - n), (0, 0)))
    g = n_pad // rt

    kernel = functools.partial(_head_kernel, matmul_dtype)
    logits = pl.pallas_call(
        kernel,
        out_shape=jax.ShapeDtypeStruct((g, 1, rt), jnp.float32),
        grid=(g,),
        in_specs=[
            pl.BlockSpec((rt, H), lambda i: (i, 0)),                    # x rows
            pl.BlockSpec(params["w1"].shape, lambda i: (0, 0)),         # (H, 4H)
            pl.BlockSpec(params["b1"].shape, lambda i: (0, 0)),         # (1, 4H)
            pl.BlockSpec(params["w2"].shape, lambda i: (0, 0)),         # (4H, H)
            pl.BlockSpec(params["b2"].shape, lambda i: (0, 0)),         # (1, H)
            pl.BlockSpec(params["w3"].shape, lambda i: (0, 0)),         # (1, H)
            pl.BlockSpec(memory_space=pltpu.MemorySpace.SMEM),          # b3 (1,)
        ],
        out_specs=pl.BlockSpec((1, 1, rt), lambda i: (i, 0, 0)),        # lane-dense logits
        compiler_params=pltpu.CompilerParams(
            dimension_semantics=("parallel",)),
    )(x2, params["w1"], params["b1"], params["w2"], params["b2"],
      params["w3"], params["b3"])

    return logits.reshape(n_pad)[:n].reshape(lead)


# -------------------- pure-JAX reference (correctness check) ----------------
def _reference(decoder_feats, params):
    x = decoder_feats.astype(jnp.float32)
    h1 = jax.nn.silu(x @ params["w1"] + params["b1"][0])
    h2 = jax.nn.silu(h1 @ params["w2"] + params["b2"][0])
    h = x + h2
    logits = jnp.einsum("...h,h->...", h, params["w3"][0]) + params["b3"][0]
    return logits


# -------------------------------- main ---------------------------------------
if __name__ == "__main__":
    # Small config: batch=2, seq=8, hidden_size=32 (ffn dim = 4*32 = 128).
    B, T, H = 2, 8, 32
    F4 = 4 * H

    key = jax.random.PRNGKey(0)
    ks = jax.random.split(key, 8)

    decoder_feats = jax.random.normal(ks[0], (B, T, H), dtype=jnp.float32)

    # Linear weights stored (in, out), i.e. transposed w.r.t. PyTorch's (out, in).
    params = {
        "w1": jax.random.normal(ks[1], (H, F4), jnp.float32) * (H ** -0.5),
        "b1": jax.random.normal(ks[2], (1, F4), jnp.float32) * 0.02,
        "w2": jax.random.normal(ks[3], (F4, H), jnp.float32) * (F4 ** -0.5),
        "b2": jax.random.normal(ks[4], (1, H), jnp.float32) * 0.02,
        "w3": jax.random.normal(ks[5], (1, H), jnp.float32) * (H ** -0.5),   # out_fc weight
        "b3": jax.random.normal(ks[6], (1,), jnp.float32) * 0.02,            # out_fc bias
    }

    logits = bernoulli_prediction_head(decoder_feats, params)
    logits = jax.block_until_ready(logits)

    ref = _reference(decoder_feats, params)
    assert logits.shape == (B, T), f"bad shape {logits.shape}"
    assert jnp.max(jnp.abs(logits - ref)) < 1e-4, "logits mismatch vs reference"

    print("KERNEL_OK")
</pallas_src>

<mosaic_0001>
module attributes {stable_mosaic.version = 11 : i64} {
  func.func @_head_kernel(%arg0: i32, %arg1: memref<16x32xf32, #tpu.memory_space<vmem>>, %arg2: memref<32x128xf32, #tpu.memory_space<vmem>>, %arg3: memref<1x128xf32, #tpu.memory_space<vmem>>, %arg4: memref<128x32xf32, #tpu.memory_space<vmem>>, %arg5: memref<1x32xf32, #tpu.memory_space<vmem>>, %arg6: memref<1x32xf32, #tpu.memory_space<vmem>>, %arg7: memref<1xf32, #tpu.memory_space<smem>>, %arg8: memref<1x1x16xf32, #tpu.memory_space<vmem>>) attributes {dimension_semantics = [#tpu.dimension_semantics<parallel>], iteration_bounds = array<i64: 1>, scalar_prefetch = 0 : i64, scratch_operands = 0 : i64, tpu.core_type = #tpu.core_type<tc>, window_params = [{transform_indices = @transform_0, window_bounds = array<i64: 16, 32>}, {pipeline_mode = #tpu.pipeline_mode<synchronous>, transform_indices = @transform_1, window_bounds = array<i64: 32, 128>}, {pipeline_mode = #tpu.pipeline_mode<synchronous>, transform_indices = @transform_2, window_bounds = array<i64: 1, 128>}, {pipeline_mode = #tpu.pipeline_mode<synchronous>, transform_indices = @transform_3, window_bounds = array<i64: 128, 32>}, {pipeline_mode = #tpu.pipeline_mode<synchronous>, transform_indices = @transform_4, window_bounds = array<i64: 1, 32>}, {pipeline_mode = #tpu.pipeline_mode<synchronous>, transform_indices = @transform_5, window_bounds = array<i64: 1, 32>}, {transform_indices = @transform_6, window_bounds = array<i64: 1>}, {transform_indices = @transform_7, window_bounds = array<i64: 1, 1, 16>}]} {
    %c0 = arith.constant 0 : index
    %c0_0 = arith.constant 0 : index
    %0 = vector.load %arg1[%c0, %c0_0] : memref<16x32xf32, #tpu.memory_space<vmem>>, vector<16x32xf32>
    %c0_1 = arith.constant 0 : index
    %c0_2 = arith.constant 0 : index
    %1 = vector.load %arg2[%c0_1, %c0_2] : memref<32x128xf32, #tpu.memory_space<vmem>>, vector<32x128xf32>
    %cst = arith.constant dense<0.000000e+00> : vector<16x128xf32>
    %2 = tpu.matmul %0, %1, %cst {dimension_numbers = #tpu.dot_dimension_numbers<[1], [0], [0], [1], [0, 0, 1, 1], [], []>} : vector<16x32xf32>, vector<32x128xf32>, vector<16x128xf32> -> vector<16x128xf32>
    %c0_3 = arith.constant 0 : index
    %c0_4 = arith.constant 0 : index
    %3 = vector.load %arg3[%c0_3, %c0_4] : memref<1x128xf32, #tpu.memory_space<vmem>>, vector<1x128xf32>
    %4 = vector.broadcast %3 : vector<1x128xf32> to vector<16x128xf32>
    %5 = arith.addf %2, %4 : vector<16x128xf32>
    %cst_5 = arith.constant 0.000000e+00 : f32
    %6 = vector.broadcast %cst_5 : f32 to vector<16x128xf32>
    %7 = arith.subf %6, %5 : vector<16x128xf32>
    %8 = math.exp %7 : vector<16x128xf32>
    %cst_6 = arith.constant 1.000000e+00 : f32
    %9 = vector.broadcast %cst_6 : f32 to vector<16x128xf32>
    %10 = arith.addf %9, %8 : vector<16x128xf32>
    %cst_7 = arith.constant 1.000000e+00 : f32
    %11 = vector.broadcast %cst_7 : f32 to vector<16x128xf32>
    %12 = arith.divf %11, %10 : vector<16x128xf32>
    %13 = arith.mulf %5, %12 : vector<16x128xf32>
    %c0_8 = arith.constant 0 : index
    %c0_9 = arith.constant 0 : index
    %14 = vector.load %arg4[%c0_8, %c0_9] : memref<128x32xf32, #tpu.memory_space<vmem>>, vector<128x32xf32>
    %cst_10 = arith.constant dense<0.000000e+00> : vector<16x32xf32>
    %15 = tpu.matmul %13, %14, %cst_10 {dimension_numbers = #tpu.dot_dimension_numbers<[1], [0], [0], [1], [0, 0, 1, 1], [], []>} : vector<16x128xf32>, vector<128x32xf32>, vector<16x32xf32> -> vector<16x32xf32>
    %c0_11 = arith.constant 0 : index
    %c0_12 = arith.constant 0 : index
    %16 = vector.load %arg5[%c0_11, %c0_12] : memref<1x32xf32, #tpu.memory_space<vmem>>, vector<1x32xf32>
    %17 = vector.broadcast %16 : vector<1x32xf32> to vector<16x32xf32>
    %18 = arith.addf %15, %17 : vector<16x32xf32>
    %cst_13 = arith.constant 0.000000e+00 : f32
    %19 = vector.broadcast %cst_13 : f32 to vector<16x32xf32>
    %20 = arith.subf %19, %18 : vector<16x32xf32>
    %21 = math.exp %20 : vector<16x32xf32>
    %cst_14 = arith.constant 1.000000e+00 : f32
    %22 = vector.broadcast %cst_14 : f32 to vector<16x32xf32>
    %23 = arith.addf %22, %21 : vector<16x32xf32>
    %cst_15 = arith.constant 1.000000e+00 : f32
    %24 = vector.broadcast %cst_15 : f32 to vector<16x32xf32>
    %25 = arith.divf %24, %23 : vector<16x32xf32>
    %26 = arith.mulf %18, %25 : vector<16x32xf32>
    %27 = arith.addf %0, %26 : vector<16x32xf32>
    %c0_16 = arith.constant 0 : index
    %c0_17 = arith.constant 0 : index
    %28 = vector.load %arg6[%c0_16, %c0_17] : memref<1x32xf32, #tpu.memory_space<vmem>>, vector<1x32xf32>
    %cst_18 = arith.constant dense<0.000000e+00> : vector<1x16xf32>
    %29 = tpu.matmul %28, %27, %cst_18 {dimension_numbers = #tpu.dot_dimension_numbers<[1], [1], [0], [0], [0, 0, 1, 0], [], []>} : vector<1x32xf32>, vector<16x32xf32>, vector<1x16xf32> -> vector<1x16xf32>
    %c0_19 = arith.constant 0 : index
    %30 = memref.load %arg7[%c0_19] : memref<1xf32, #tpu.memory_space<smem>>
    %31 = vector.broadcast %30 : f32 to vector<1x16xf32>
    %32 = arith.addf %29, %31 : vector<1x16xf32>
    %c0_20 = arith.constant 0 : index
    %c0_21 = arith.constant 0 : index
    %c0_22 = arith.constant 0 : index
    %33 = vector.load %arg8[%c0_20, %c0_21, %c0_22] : memref<1x1x16xf32, #tpu.memory_space<vmem>>, vector<1x1x16xf32>
    %34 = vector.shape_cast %33 : vector<1x1x16xf32> to vector<1x16xf32>
    %35 = vector.shape_cast %32 : vector<1x16xf32> to vector<1x1x16xf32>
    tpu.vector_store %arg8[%c0_20, %c0_21, %c0_22], %35 {strides = array<i32>} : memref<1x1x16xf32, #tpu.memory_space<vmem>>, vector<1x1x16xf32>,
    return
  }
  func.func @transform_0(%arg0: i32) -> (i32, i32) {
    %c0_i32 = arith.constant 0 : i32
    %c0_i32_0 = arith.constant 0 : i32
    return %arg0, %c0_i32 : i32, i32
  }
  func.func @transform_1(%arg0: i32) -> (i32, i32) {
    %c0_i32 = arith.constant 0 : i32
    %c0_i32_0 = arith.constant 0 : i32
    %c0_i32_1 = arith.constant 0 : i32
    return %c0_i32, %c0_i32_0 : i32, i32
  }
  func.func @transform_2(%arg0: i32) -> (i32, i32) {
    %c0_i32 = arith.constant 0 : i32
    %c0_i32_0 = arith.constant 0 : i32
    %c0_i32_1 = arith.constant 0 : i32
    return %c0_i32, %c0_i32_0 : i32, i32
  }
  func.func @transform_3(%arg0: i32) -> (i32, i32) {
    %c0_i32 = arith.constant 0 : i32
    %c0_i32_0 = arith.constant 0 : i32
    %c0_i32_1 = arith.constant 0 : i32
    return %c0_i32, %c0_i32_0 : i32, i32
  }
  func.func @transform_4(%arg0: i32) -> (i32, i32) {
    %c0_i32 = arith.constant 0 : i32
    %c0_i32_0 = arith.constant 0 : i32
    %c0_i32_1 = arith.constant 0 : i32
    return %c0_i32, %c0_i32_0 : i32, i32
  }
  func.func @transform_5(%arg0: i32) -> (i32, i32) {
    %c0_i32 = arith.constant 0 : i32
    %c0_i32_0 = arith.constant 0 : i32
    %c0_i32_1 = arith.constant 0 : i32
    return %c0_i32, %c0_i32_0 : i32, i32
  }
  func.func @transform_6(%arg0: i32) -> i32 {
    %c0_i32 = arith.constant 0 : i32
    %c0_i32_0 = arith.constant 0 : i32
    return %c0_i32 : i32
  }
  func.func @transform_7(%arg0: i32) -> (i32, i32, i32) {
    %c0_i32 = arith.constant 0 : i32
    %c0_i32_0 = arith.constant 0 : i32
    %c0_i32_1 = arith.constant 0 : i32
    return %arg0, %c0_i32, %c0_i32_0 : i32, i32, i32
  }
}

</mosaic_0001>

<bundles_post_ra>
// kernel: tpu_custom_call.1
= control target key start
LH: loop header
LB: loop body
LE: loop exit
PB: predicated region body
PF: predicated region fallthrough
CT: control target
= control target key end

     0   :  { %s444_s0 = inlined_call_operand.vmem [shape: f32[16,32], index: 0, kind: input, shape index: {}]   ;;  %s445_s1 = inlined_call_operand.vmem [shape: f32[32,128], index: 1, kind: input, shape index: {}]   ;;  %s446_s2 = inlined_call_operand.vmem [shape: f32[1,128], index: 2, kind: input, shape index: {}]   ;;  %s447_s3 = inlined_call_operand.vmem [shape: f32[128,32], index: 3, kind: input, shape index: {}]   ;;  %s448_s4 = inlined_call_operand.vmem [shape: f32[1,32], index: 4, kind: input, shape index: {}]   ;;  %s449_s5 = inlined_call_operand.vmem [shape: f32[1,32], index: 5, kind: input, shape index: {}]   ;;  %s450_s6 = inlined_call_operand.<no memory space> [shape: f32[1], index: 6, kind: input, shape index: {}]   ;;  %s451_s7 = inlined_call_operand.hbm [shape: f32[1,1,16], index: 7, kind: output, shape index: {}]  }
   0x1   :  { %v33_v0 = vld [vmem:[%s445_s1 + $0x18] sm:$0xff]  ;;  %v32_v1 = vld [vmem:[%s445_s1 + $0x10] sm:$0xff]  ;;  %v31_v2 = vld [vmem:[%s445_s1 + $0x8] sm:$0xff] }
   0x2   :  { %57 = vmatpush.msra.mxu0 %v33_v0 }
   0x4   :  { %58 = vmatpush.msra.mxu0 %v32_v1 }
   0x5   :  { %13 = vsyncpa [#allocation4], 0  ;;  %v30_v3 = vld [vmem:[%s445_s1] sm:$0xff]  ;;  %vm38_vm0 = vcmask 261120   ;;  %v372_v5 = vld [vmem:[%s444_s0 + $0x8] sm:$0xff]  ;;  %s309_s23 = smov [#allocation3]  }
   0x6   :  { %59 = vmatpush.msra.mxu0 %v31_v2  ;;  %v365_v4 = vld [vmem:[%s444_s0] sm:$0xff]  ;;  %v123_v6 = vld [vmem:[%s447_s3 + $0x78] sm:$0xff]  ;;  %v122_v7 = vld [vmem:[%s447_s3 + $0x70] sm:$0xff]  ;;  %s232_s24 = sshll.u32 %s309_s23, 4  ;;  %s234_s27 = sshll.u32 %s451_s7, 4  ;;  %s233_s24 = int_to_ptr.vmem [resolvable:$true] %s232_s24  ;;  %s235_s27 = int_to_ptr.hbm [resolvable:$true] %s234_s27 }
   0x7   :  { %128 = vmatpush.msra.mxu1 %v123_v6  ;;  %248 = vmatpush.msra.mxu3 %v123_v6  ;;  %v121_v8 = vld [vmem:[%s447_s3 + $0x68] sm:$0xff]  ;;  %v120_v9 = vld [vmem:[%s447_s3 + $0x60] sm:$0xff]  ;;  %v119_v10 = vld [vmem:[%s447_s3 + $0x58] sm:$0xff] }
   0x8   :  { %60 = vmatpush.msra.mxu0 %v30_v3  ;;  %v118_v11 = vld [vmem:[%s447_s3 + $0x50] sm:$0xff]  ;;  %v117_v12 = vld [vmem:[%s447_s3 + $0x48] sm:$0xff]  ;;  %v116_v13 = vld [vmem:[%s447_s3 + $0x40] sm:$0xff] }
   0x9   :  { %243 = vmatmul.msk.f32.vlgmr.msra.gmra.mxu0 %vm38_vm0, %v365_v4  ;;  %129 = vmatpush.msra.mxu1 %v122_v7  ;;  %v115_v14 = vld [vmem:[%s447_s3 + $0x38] sm:$0xff]  ;;  %v114_v15 = vld [vmem:[%s447_s3 + $0x30] sm:$0xff]  ;;  %v113_v16 = vld [vmem:[%s447_s3 + $0x28] sm:$0xff] }
   0xa   :  { %249 = vmatpush.msra.mxu3 %v122_v7  ;;  %v112_v17 = vld [vmem:[%s447_s3 + $0x20] sm:$0xff]  ;;  %v111_v18 = vld [vmem:[%s447_s3 + $0x18] sm:$0xff]  ;;  %v110_v19 = vld [vmem:[%s447_s3 + $0x10] sm:$0xff] }
   0xb   :  { %130 = vmatpush.msra.mxu1 %v121_v8  ;;  %v265_v20 = vld [vmem:[%s446_s2] ss:$0 sm:$0xff]  ;;  %v109_v21 = vld [vmem:[%s447_s3 + $0x8] sm:$0xff] }
   0xc   :  { %250 = vmatpush.msra.mxu3 %v121_v8  ;;  %v108_v22 = vld [vmem:[%s447_s3] sm:$0xff] }
   0xd   :  { %131 = vmatpush.msra.mxu1 %v120_v9  ;;  %v266_v57 = vld [vmem:[%s448_s4] ss:$0 sm:$0xff] }
   0xe   :  { %251 = vmatpush.msra.mxu3 %v120_v9 }
   0xf   :  { %132 = vmatpush.msra.mxu1 %v119_v10 }
  0x10   :  { %252 = vmatpush.msra.mxu3 %v119_v10 }
  0x11   :  { %244 = vmatmul.msk.f32.gmra.mxu0 %vm38_vm0, %v372_v5  ;;  %133 = vmatpush.msra.mxu1 %v118_v11 }
  0x12   :  { %253 = vmatpush.msra.mxu3 %v118_v11 }
  0x13   :  { %134 = vmatpush.msra.mxu1 %v117_v12 }
  0x14   :  { %254 = vmatpush.msra.mxu3 %v117_v12 }
  0x15   :  { %135 = vmatpush.msra.mxu1 %v116_v13 }
  0x16   :  { %255 = vmatpush.msra.mxu3 %v116_v13 }
  0x17   :  { %136 = vmatpush.msra.mxu1 %v115_v14 }
  0x18   :  { %256 = vmatpush.msra.mxu3 %v115_v14 }
  0x19   :  { %137 = vmatpush.msra.mxu1 %v114_v15 }
  0x1a   :  { %257 = vmatpush.msra.mxu3 %v114_v15 }
  0x1b   :  { %138 = vmatpush.msra.mxu1 %v113_v16 }
  0x1c   :  { %258 = vmatpush.msra.mxu3 %v113_v16 }
  0x1d   :  { %139 = vmatpush.msra.mxu1 %v112_v17 }
  0x1e   :  { %259 = vmatpush.msra.mxu3 %v112_v17 }
  0x1f   :  { %140 = vmatpush.msra.mxu1 %v111_v18 }
  0x20   :  { %260 = vmatpush.msra.mxu3 %v111_v18 }
  0x21   :  { %141 = vmatpush.msra.mxu1 %v110_v19 }
  0x22   :  { %261 = vmatpush.msra.mxu3 %v110_v19 }
  0x23   :  { %142 = vmatpush.msra.mxu1 %v109_v21 }
  0x24   :  { %262 = vmatpush.msra.mxu3 %v109_v21 }
  0x25   :  { %143 = vmatpush.msra.mxu1 %v108_v22 }
  0x26   :  { %263 = vmatpush.msra.mxu3 %v108_v22 }
  0x86   :  { %v62_v23 = vpop.f32.mrf.mxu0 }
  0x87   :  { %v63_v24 = vadd.f32 %v265_v20, %v62_v23 }
  0x89   :  { %v68_v25 = vsub.f32 0.0, %v63_v24 }
  0x8b   :  { %v70_v26 = vmul.f32 1.442695, %v68_v25 }
  0x8d   :  { %267 = vpow2.f32 %v70_v26 }
  0x8e   :  { %v65_v27 = vpop.f32.mrf.mxu0 }
  0x8f   :  { %v66_v28 = vadd.f32 %v265_v20, %v65_v27 }
  0x91   :  { %v69_v29 = vsub.f32 0.0, %v66_v28 }
  0x93   :  { %v268_v30 = vpop.eup %267  ;;  %v72_v31 = vmul.f32 1.442695, %v69_v29 }
  0x94   :  { %v74_v32 = vadd.f32 1.0, %v268_v30 }
  0x95   :  { %269 = vpow2.f32 %v72_v31 }
  0x96   :  { %271 = vrcp.f32 %v74_v32  ;;  %v87_v38 = vand.u32 2147483648, %v74_v32  ;;  %v85_v40 = vand.u32 2147483647, %v74_v32  ;;  %vm81_vm2 = vweird.f32 %v74_v32 }
  0x98   :  { %v88_v43 = vor.u32 1.1754944e-38, %v87_v38  ;;  %vm86_vm4 = vcmp.eq.f32.partialorder %v85_v40, 8.507059e+37 }
  0x9b   :  { %v270_v33 = vpop.eup %269 }
  0x9c   :  { %v272_v34 = vpop.eup %271  ;;  %v75_v35 = vadd.f32 1.0, %v270_v33  ;;  %v195_v33 = vstv %s450_s6 }
  0x9d   :  { %v77_v36 = vmul.f32 %v272_v34, %v74_v32  ;;  %vm82_vm1 = vweird.f32 %v272_v34  ;;  %v193_v32 = vld [vmem:[%s449_s5] sm:$0x1] }
  0x9e   :  { %273 = vrcp.f32 %v75_v35  ;;  %vm83_vm3 = vmor %vm81_vm2, %vm82_vm1  ;;  %v102_v49 = vand.u32 2147483648, %v75_v35  ;;  %v100_v51 = vand.u32 2147483647, %v75_v35  ;;  %vm96_vm6 = vweird.f32 %v75_v35 }
  0x9f   :  { %v78_v37 = vsub.f32 1.0, %v77_v36  ;;  %vm225_vm2 = vcmask 122880  }
  0xa0   :  { %v103_v53 = vor.u32 1.1754944e-38, %v102_v49  ;;  %vm101_vm8 = vcmp.eq.f32.partialorder %v100_v51, 8.507059e+37 }
  0xa1   :  { %v79_v39 = vmul.f32 %v272_v34, %v78_v37 }
  0xa3   :  { %v80_v41 = vadd.f32 %v272_v34, %v79_v39 }
  0xa4   :  { %v274_v42 = vpop.eup %273 }
  0xa5   :  { %v84_v44 = vsel %vm83_vm3, %v272_v34, %v80_v41  ;;  %v92_v45 = vmul.f32 %v274_v42, %v75_v35  ;;  %vm97_vm5 = vweird.f32 %v274_v42 }
  0xa6   :  { %v89_v46 = vsel %vm86_vm4, %v88_v43, %v84_v44  ;;  %vm98_vm7 = vmor %vm96_vm6, %vm97_vm5 }
  0xa7   :  { %v106_v47 = vmul.f32 %v89_v46, %v63_v24  ;;  %v93_v48 = vsub.f32 1.0, %v92_v45 }
  0xa9   :  { %144 = vmatmul.f32.vlgmr.msra.gmra.mxu1 %v106_v47  ;;  %v94_v50 = vmul.f32 %v274_v42, %v93_v48 }
  0xab   :  { %v95_v52 = vadd.f32 %v274_v42, %v94_v50 }
  0xad   :  { %v99_v54 = vsel %vm98_vm7, %v274_v42, %v95_v52 }
  0xae   :  { %v104_v55 = vsel %vm101_vm8, %v103_v53, %v99_v54 }
  0xaf   :  { %v107_v56 = vmul.f32 %v104_v55, %v66_v28 }
  0xb1   :  { %147 = vmatmul.f32.vlgmr.msra.gmra.mxu3 %v107_v56 }
 0x126   :  { %v145_v58 = vpop.f32.mrf.mxu1 }
 0x127   :  { %v146_v59 = vadd.f32 %v266_v57, %v145_v58 }
 0x129   :  { %v151_v60 = vsub.f32 0.0, %v146_v59 }
 0x12b   :  { %v153_v61 = vmul.f32 1.442695, %v151_v60 }
 0x12d   :  { %275 = vpow2.f32 %v153_v61 }
 0x133   :  { %v276_v62 = vpop.eup %275 }
 0x134   :  { %v157_v63 = vadd.f32 1.0, %v276_v62  ;;  %v148_v0 = vpop.f32.mrf.mxu3 }
 0x135   :  { %v149_v1 = vadd.f32 %v266_v57, %v148_v0 }
 0x136   :  { %277 = vrcp.f32 %v157_v63  ;;  %vm164_vm10 = vweird.f32 %v157_v63  ;;  %v170_v16 = vand.u32 2147483648, %v157_v63  ;;  %v168_v18 = vand.u32 2147483647, %v157_v63 }
 0x137   :  { %v152_v2 = vsub.f32 0.0, %v149_v1 }
 0x138   :  { %v171_v23 = vor.u32 1.1754944e-38, %v170_v16  ;;  %vm169_vm15 = vcmp.eq.f32.partialorder %v168_v18, 8.507059e+37 }
 0x139   :  { %v155_v3 = vmul.f32 1.442695, %v152_v2 }
 0x13b   :  { %279 = vpow2.f32 %v155_v3 }
 0x13c   :  { %v278_v6 = vpop.eup %277 }
 0x13d   :  { %v160_v8 = vmul.f32 %v278_v6, %v157_v63  ;;  %vm165_vm9 = vweird.f32 %v278_v6 }
 0x13e   :  { %vm166_vm12 = vmor %vm164_vm10, %vm165_vm9 }
 0x13f   :  { %v161_v10 = vsub.f32 1.0, %v160_v8 }
 0x141   :  { %v280_v7 = vpop.eup %279  ;;  %v162_v11 = vmul.f32 %v278_v6, %v161_v10 }
 0x142   :  { %v158_v9 = vadd.f32 1.0, %v280_v7 }
 0x143   :  { %v163_v14 = vadd.f32 %v278_v6, %v162_v11 }
 0x144   :  { %281 = vrcp.f32 %v158_v9  ;;  %v185_v17 = vand.u32 2147483648, %v158_v9  ;;  %v183_v20 = vand.u32 2147483647, %v158_v9  ;;  %vm179_vm13 = vweird.f32 %v158_v9 }
 0x145   :  { %v167_v21 = vsel %vm166_vm12, %v278_v6, %v163_v14 }
 0x146   :  { %v186_v24 = vor.u32 1.1754944e-38, %v185_v17  ;;  %vm184_vm1 = vcmp.eq.f32.partialorder %v183_v20, 8.507059e+37  ;;  %v172_v26 = vsel %vm169_vm15, %v171_v23, %v167_v21 }
 0x147   :  { %v189_v29 = vmul.f32 %v172_v26, %v146_v59 }
 0x149   :  { %v191_v31 = vadd.f32 %v189_v29, %v365_v4 }
 0x14a   :  { %v282_v12 = vpop.eup %281 }
 0x14b   :  { %v175_v13 = vmul.f32 %v282_v12, %v158_v9  ;;  %vm180_vm11 = vweird.f32 %v282_v12 }
 0x14c   :  { %vm181_vm14 = vmor %vm179_vm13, %vm180_vm11 }
 0x14d   :  { %v176_v15 = vsub.f32 1.0, %v175_v13 }
 0x14f   :  { %v177_v19 = vmul.f32 %v282_v12, %v176_v15 }
 0x151   :  { %v178_v22 = vadd.f32 %v282_v12, %v177_v19 }
 0x153   :  { %v182_v25 = vsel %vm181_vm14, %v282_v12, %v178_v22 }
 0x154   :  { %v187_v27 = vsel %vm184_vm1, %v186_v24, %v182_v25 }
 0x155   :  { %v190_v28 = vmul.f32 %v187_v27, %v149_v1 }
 0x157   :  { %v192_v30 = vadd.f32 %v190_v28, %v372_v5 }
 0x159   :  { %245 = vmatpush.xpose.msk.msra.mxu2 %vm38_vm0, %v192_v30 }
 0x15d   :  { %246 = vmatpush.xpose.msk.msra.mxu2 %vm38_vm0, %v191_v31 }
 0x160   :  { %247 = vmatmul.msk.f32.vlgmr.msra.gmra.mxu2 %vm38_vm0, %v193_v32 }
 0x1e3   :  { %v222_v5 = vpop.f32.mrf.mxu2 }
 0x1e4   :  { %v223_v4 = vadd.f32 %v222_v5, %v195_v33 }
 0x1e6   :  { %226 = vst.msk [vmem:[#allocation3] sm:$0x1] %vm225_vm2, %v223_v4 }
 0x1e7   :  { %237 = dma.vmem_to_hbm [thread:$0]  %s233_s24, 16, %s235_s27, [#allocation4]  }
 0x1e8   :  { %307 = dma.done.wait [#allocation4], 16  }
 0x1e9   :  { %308 = vsyncadd [#allocation4], 4294967280 }
 0x1ea   :  { %242 = vsyncpa [#allocation4], 1 }

</bundles_post_ra>
